<compile_context>
chip_gen: v7x
topology: tpu7x:2x2x1
jax: 0.10.0
libtpu: 0.0.40
codegen_flags: <defaults>
</compile_context>

<pallas_src>
import functools

import jax
import jax.numpy as jnp
from jax.experimental import pallas as pl
from jax.experimental.pallas import tpu as pltpu

ALPHA, BETA, GAMMA, SMOOTH = 0.7, 0.3, 4.0 / 3.0, 1.0
_LANES = 128
_SUBLANES = 8


def split_mask(mask):
    # TODO(synk): split_mask was not included in the reference snippet; this is the
    # standard NeoPolyp convention: mask channels = [neoplastic, non-neoplastic, ignore].
    neo = mask[:, 0:1]
    non = mask[:, 1:2]
    ignore = mask[:, 2:3]
    polyp = jnp.clip(neo + non, 0.0, 1.0)
    bg = 1.0 - polyp
    polyp_mask = jnp.concatenate([bg, polyp], axis=1)       # (B, 2, H, W)
    neo_mask = jnp.concatenate([bg, neo, non], axis=1)      # (B, 3, H, W)
    return polyp_mask, neo_mask, ignore


def _fold_rows(x, rows):
    """Sum groups along axis -2 (sublane axis) down to `rows` using only
    sublane-tile-aligned slices (pure vreg adds, no cross-lane/sublane shuffles)."""
    s = x.shape[-2]
    if s == rows:
        return x
    assert s % rows == 0
    chunks = [x[..., k * rows:(k + 1) * rows, :] for k in range(s // rows)]
    while len(chunks) > 1:
        nxt = [a + b for a, b in zip(chunks[0::2], chunks[1::2])]
        if len(chunks) % 2:
            nxt.append(chunks[-1])
        chunks = nxt
    return chunks[0]


def _loss_sums_kernel(pred_ref, mask_ref, tp_ref, sp_ref, st_ref, ce_ref,
                      *, hw, ts, rows_out, need_mask):
    """Per (batch, pixel-tile) grid step, accumulates sublane/lane-dense partials of:
         tp  = softmax(pred) * target * valid        (per class)
         sp  = softmax(pred) * valid                 (per class)
         st  = target * valid                        (per class)
         ce  = cross_entropy(pred, argmax(target)) * valid
       Target [bg, neo, non], ignore weight and the argmax label are all rebuilt
       in-kernel from the raw 3-channel mask block."""
    i = pl.program_id(1)

    @pl.when(i == 0)
    def _():
        tp_ref[...] = jnp.zeros_like(tp_ref)
        sp_ref[...] = jnp.zeros_like(sp_ref)
        st_ref[...] = jnp.zeros_like(st_ref)
        ce_ref[...] = jnp.zeros_like(ce_ref)

    p = pred_ref[...].astype(jnp.float32)        # (3, TS, 128) logits
    mk = mask_ref[...].astype(jnp.float32)       # (3, TS, 128): [neo, non, ignore]
    neo, non, ign = mk[0], mk[1], mk[2]

    if need_mask:
        # Mask pixels that are past the real image (padding / partial last tile).
        row = jax.lax.broadcasted_iota(jnp.int32, (ts, _LANES), 0)
        lane = jax.lax.broadcasted_iota(jnp.int32, (ts, _LANES), 1)
        pix = (i * ts + row) * _LANES + lane
        valid = pix < hw
        p = jnp.where(valid[None], p, 0.0)
        neo = jnp.where(valid, neo, 0.0)
        non = jnp.where(valid, non, 0.0)
        g = jnp.where(valid, 1.0 - ign, 0.0)     # valid weight = (1 - ignore) * in-bounds
    else:
        g = 1.0 - ign

    bg = 1.0 - jnp.clip(neo + non, 0.0, 1.0)
    t = jnp.stack([bg, neo, non], axis=0)        # (3, TS, 128) one-hot-ish target

    # Softmax over the (leading) class axis: purely elementwise across 3 slabs.
    mx = jnp.max(p, axis=0)                      # (TS, 128)
    e = jnp.exp(p - mx[None])                    # (3, TS, 128)
    den = jnp.sum(e, axis=0)                     # (TS, 128)
    w = g / den                                  # 1/denominator fused with valid weight
    sm_g = e * w[None]                           # softmax(p) * (1 - ignore)

    # Cross entropy vs argmax(target), torch-style first-max tie break (C == 3).
    lse = mx + jnp.log(den)
    picked = jnp.where(bg >= jnp.maximum(neo, non), p[0],
                       jnp.where(neo >= non, p[1], p[2]))
    ce = (lse - picked) * g                      # (TS, 128)

    # Sublane/lane-dense accumulation into the resident output block (no XLU reduce,
    # no narrow stores in the hot loop).
    tp_ref[...] += _fold_rows(sm_g * t, rows_out)
    sp_ref[...] += _fold_rows(sm_g, rows_out)
    st_ref[...] += _fold_rows(t * g[None], rows_out)
    ce_ref[...] += _fold_rows(ce, rows_out)


def hardnet_mseg_loss(y_pr, mask, tile_sublanes=512):
    B, C, H, W = y_pr.shape
    assert C == 3 and mask.shape[1] == 3, "HarDNetMSEGLoss multi-class branch expects 3 classes"
    HW = H * W
    N = B * HW

    # Lay pixels out on (sublane, lane) = (HW/128, 128) with no transpose. Only pad when
    # HW is not a multiple of 8*128 (rare for real image sizes); padded pixels are masked
    # out inside the kernel.
    pad = (-HW) % (_SUBLANES * _LANES)
    pred = y_pr.reshape(B, C, HW)
    msk = mask.reshape(B, 3, HW)
    if pad:
        pred = jnp.pad(pred, ((0, 0), (0, 0), (0, pad)))
        msk = jnp.pad(msk, ((0, 0), (0, 0), (0, pad)))
    nr = (HW + pad) // _LANES                     # number of 128-pixel rows
    pred = pred.reshape(B, C, nr, _LANES)
    msk = msk.reshape(B, 3, nr, _LANES)

    ts = min(int(tile_sublanes), nr)              # sublane rows per tile (pixels = ts*128)
    ts = max(_SUBLANES, (ts // _SUBLANES) * _SUBLANES)
    n_tiles = pl.cdiv(nr, ts)
    rows_out = _SUBLANES
    need_mask = (HW % (ts * _LANES)) != 0

    kernel = functools.partial(_loss_sums_kernel, hw=HW, ts=ts,
                               rows_out=rows_out, need_mask=need_mask)

    acc3 = jax.ShapeDtypeStruct((B, C, rows_out, _LANES), jnp.float32)
    acc2 = jax.ShapeDtypeStruct((B, rows_out, _LANES), jnp.float32)
    tp, sp, st, ce = pl.pallas_call(
        kernel,
        out_shape=(acc3, acc3, acc3, acc2),
        grid_spec=pltpu.PrefetchScalarGridSpec(
            num_scalar_prefetch=0,
            grid=(B, n_tiles),
            in_specs=[
                pl.BlockSpec((None, C, ts, _LANES), lambda b, i: (b, 0, i, 0)),
                pl.BlockSpec((None, 3, ts, _LANES), lambda b, i: (b, 0, i, 0)),
            ],
            out_specs=[
                pl.BlockSpec((None, C, rows_out, _LANES), lambda b, i: (b, 0, 0, 0)),
                pl.BlockSpec((None, C, rows_out, _LANES), lambda b, i: (b, 0, 0, 0)),
                pl.BlockSpec((None, C, rows_out, _LANES), lambda b, i: (b, 0, 0, 0)),
                pl.BlockSpec((None, rows_out, _LANES), lambda b, i: (b, 0, 0)),
            ],
        ),
        compiler_params=pltpu.CompilerParams(
            dimension_semantics=("parallel", "arbitrary")),
    )(pred, msk)

    # Tiny O(B*C*8*128) finalize in plain JAX.
    tp = jnp.sum(tp, axis=(0, 2, 3))
    fp = jnp.sum(sp, axis=(0, 2, 3)) - tp
    fn = jnp.sum(st, axis=(0, 2, 3)) - tp

    ce_loss = jnp.sum(ce) / N                    # mean over all B*H*W pixels
    ft_score = (tp + SMOOTH) / (tp + ALPHA * fp + BETA * fn + SMOOTH)
    ft_loss = jnp.mean((1.0 - ft_score) ** GAMMA)
    return ce_loss + ft_loss


def reference_loss(y_pr, mask):
    """Pure-JAX reference mirroring the PyTorch forward (multi-class branch)."""
    _, neo_mask, ignore = split_mask(mask)
    labels = jnp.argmax(neo_mask, axis=1)                               # (B, H, W)
    logp = jax.nn.log_softmax(y_pr, axis=1)
    ce = -jnp.take_along_axis(logp, labels[:, None], axis=1)[:, 0]      # (B, H, W)
    valid = 1.0 - ignore[:, 0]
    ce_loss = jnp.mean(ce * valid)

    sm = jax.nn.softmax(y_pr, axis=1)
    ig = 1.0 - ignore
    tp = jnp.sum(sm * neo_mask * ig, axis=(0, 2, 3))
    fp = jnp.sum(sm * ig, axis=(0, 2, 3)) - tp
    fn = jnp.sum(neo_mask * ig, axis=(0, 2, 3)) - tp
    ft_score = (tp + SMOOTH) / (tp + ALPHA * fp + BETA * fn + SMOOTH)
    ft_loss = jnp.mean((1.0 - ft_score) ** GAMMA)
    return ce_loss + ft_loss


if __name__ == "__main__":
    key = jax.random.PRNGKey(0)
    k1, k2, k3 = jax.random.split(key, 3)

    B, C, H, W = 2, 3, 16, 16
    y_pr = jax.random.normal(k1, (B, C, H, W), dtype=jnp.float32)

    # mask channels: [neoplastic, non-neoplastic, ignore]
    labels = jax.random.randint(k2, (B, H, W), 0, 3)          # 0=background, 1=neo, 2=non-neo
    neo = (labels == 1).astype(jnp.float32)[:, None]
    non = (labels == 2).astype(jnp.float32)[:, None]
    ignore = (jax.random.uniform(k3, (B, 1, H, W)) < 0.1).astype(jnp.float32)
    mask = jnp.concatenate([neo, non, ignore], axis=1)        # (B, 3, H, W)

    loss = jax.block_until_ready(hardnet_mseg_loss(y_pr, mask))
    ref = reference_loss(y_pr, mask)
    assert jnp.abs(loss - ref) < 5e-5, (float(loss), float(ref))
    print("KERNEL_OK")
</pallas_src>

<mosaic_0001>
module attributes {stable_mosaic.version = 11 : i64} {
  func.func @_loss_sums_kernel(%arg0: i32, %arg1: i32, %arg2: memref<1x3x8x128xf32, #tpu.memory_space<vmem>>, %arg3: memref<1x3x8x128xf32, #tpu.memory_space<vmem>>, %arg4: memref<1x3x8x128xf32, #tpu.memory_space<vmem>>, %arg5: memref<1x3x8x128xf32, #tpu.memory_space<vmem>>, %arg6: memref<1x3x8x128xf32, #tpu.memory_space<vmem>>, %arg7: memref<1x8x128xf32, #tpu.memory_space<vmem>>) attributes {dimension_semantics = [#tpu.dimension_semantics<parallel>, #tpu.dimension_semantics<arbitrary>], iteration_bounds = array<i64: 2, 1>, scalar_prefetch = 0 : i64, scratch_operands = 0 : i64, tpu.core_type = #tpu.core_type<tc>, window_params = [{transform_indices = @transform_0, window_bounds = array<i64: 1, 3, 8, 128>}, {transform_indices = @transform_1, window_bounds = array<i64: 1, 3, 8, 128>}, {transform_indices = @transform_2, window_bounds = array<i64: 1, 3, 8, 128>}, {transform_indices = @transform_3, window_bounds = array<i64: 1, 3, 8, 128>}, {transform_indices = @transform_4, window_bounds = array<i64: 1, 3, 8, 128>}, {transform_indices = @transform_5, window_bounds = array<i64: 1, 8, 128>}]} {
    %c0_i32 = arith.constant 0 : i32
    %0 = arith.cmpi eq, %arg1, %c0_i32 : i32
    %1 = arith.extui %0 : i1 to i32
    %c0_i32_0 = arith.constant 0 : i32
    %2 = arith.cmpi ne, %1, %c0_i32_0 : i32
    scf.if %2 {
      %cst_47 = arith.constant 0.000000e+00 : f32
      %100 = vector.broadcast %cst_47 : f32 to vector<3x8x128xf32>
      %c0_48 = arith.constant 0 : index
      %c0_49 = arith.constant 0 : index
      %c0_50 = arith.constant 0 : index
      %c0_51 = arith.constant 0 : index
      %101 = vector.load %arg4[%c0_48, %c0_49, %c0_50, %c0_51] : memref<1x3x8x128xf32, #tpu.memory_space<vmem>>, vector<1x3x8x128xf32>
      %102 = vector.shape_cast %101 : vector<1x3x8x128xf32> to vector<3x8x128xf32>
      %103 = vector.shape_cast %100 : vector<3x8x128xf32> to vector<1x3x8x128xf32>
      tpu.vector_store %arg4[%c0_48, %c0_49, %c0_50, %c0_51], %103 {strides = array<i32>} : memref<1x3x8x128xf32, #tpu.memory_space<vmem>>, vector<1x3x8x128xf32>,
      %cst_52 = arith.constant 0.000000e+00 : f32
      %104 = vector.broadcast %cst_52 : f32 to vector<3x8x128xf32>
      %c0_53 = arith.constant 0 : index
      %c0_54 = arith.constant 0 : index
      %c0_55 = arith.constant 0 : index
      %c0_56 = arith.constant 0 : index
      %105 = vector.load %arg5[%c0_53, %c0_54, %c0_55, %c0_56] : memref<1x3x8x128xf32, #tpu.memory_space<vmem>>, vector<1x3x8x128xf32>
      %106 = vector.shape_cast %105 : vector<1x3x8x128xf32> to vector<3x8x128xf32>
      %107 = vector.shape_cast %104 : vector<3x8x128xf32> to vector<1x3x8x128xf32>
      tpu.vector_store %arg5[%c0_53, %c0_54, %c0_55, %c0_56], %107 {strides = array<i32>} : memref<1x3x8x128xf32, #tpu.memory_space<vmem>>, vector<1x3x8x128xf32>,
      %cst_57 = arith.constant 0.000000e+00 : f32
      %108 = vector.broadcast %cst_57 : f32 to vector<3x8x128xf32>
      %c0_58 = arith.constant 0 : index
      %c0_59 = arith.constant 0 : index
      %c0_60 = arith.constant 0 : index
      %c0_61 = arith.constant 0 : index
      %109 = vector.load %arg6[%c0_58, %c0_59, %c0_60, %c0_61] : memref<1x3x8x128xf32, #tpu.memory_space<vmem>>, vector<1x3x8x128xf32>
      %110 = vector.shape_cast %109 : vector<1x3x8x128xf32> to vector<3x8x128xf32>
      %111 = vector.shape_cast %108 : vector<3x8x128xf32> to vector<1x3x8x128xf32>
      tpu.vector_store %arg6[%c0_58, %c0_59, %c0_60, %c0_61], %111 {strides = array<i32>} : memref<1x3x8x128xf32, #tpu.memory_space<vmem>>, vector<1x3x8x128xf32>,
      %cst_62 = arith.constant 0.000000e+00 : f32
      %112 = vector.broadcast %cst_62 : f32 to vector<8x128xf32>
      %c0_63 = arith.constant 0 : index
      %c0_64 = arith.constant 0 : index
      %c0_65 = arith.constant 0 : index
      %113 = vector.load %arg7[%c0_63, %c0_64, %c0_65] : memref<1x8x128xf32, #tpu.memory_space<vmem>>, vector<1x8x128xf32>
      %114 = vector.shape_cast %113 : vector<1x8x128xf32> to vector<8x128xf32>
      %115 = vector.shape_cast %112 : vector<8x128xf32> to vector<1x8x128xf32>
      tpu.vector_store %arg7[%c0_63, %c0_64, %c0_65], %115 {strides = array<i32>} : memref<1x8x128xf32, #tpu.memory_space<vmem>>, vector<1x8x128xf32>,
    } else {
    }
    %c0 = arith.constant 0 : index
    %c0_1 = arith.constant 0 : index
    %c0_2 = arith.constant 0 : index
    %c0_3 = arith.constant 0 : index
    %3 = vector.load %arg2[%c0, %c0_1, %c0_2, %c0_3] : memref<1x3x8x128xf32, #tpu.memory_space<vmem>>, vector<1x3x8x128xf32>
    %4 = vector.shape_cast %3 : vector<1x3x8x128xf32> to vector<3x8x128xf32>
    %c0_4 = arith.constant 0 : index
    %c0_5 = arith.constant 0 : index
    %c0_6 = arith.constant 0 : index
    %c0_7 = arith.constant 0 : index
    %5 = vector.load %arg3[%c0_4, %c0_5, %c0_6, %c0_7] : memref<1x3x8x128xf32, #tpu.memory_space<vmem>>, vector<1x3x8x128xf32>
    %6 = vector.shape_cast %5 : vector<1x3x8x128xf32> to vector<3x8x128xf32>
    %7 = vector.extract_strided_slice %6 {offsets = [0, 0, 0], sizes = [1, 8, 128], strides = [1, 1, 1]} : vector<3x8x128xf32> to vector<1x8x128xf32>
    %8 = vector.shape_cast %7 : vector<1x8x128xf32> to vector<8x128xf32>
    %9 = vector.extract_strided_slice %6 {offsets = [1, 0, 0], sizes = [1, 8, 128], strides = [1, 1, 1]} : vector<3x8x128xf32> to vector<1x8x128xf32>
    %10 = vector.shape_cast %9 : vector<1x8x128xf32> to vector<8x128xf32>
    %11 = vector.extract_strided_slice %6 {offsets = [2, 0, 0], sizes = [1, 8, 128], strides = [1, 1, 1]} : vector<3x8x128xf32> to vector<1x8x128xf32>
    %12 = vector.shape_cast %11 : vector<1x8x128xf32> to vector<8x128xf32>
    %13 = tpu.iota {dimensions = array<i32: 0>} : vector<8x128xi32>
    %14 = tpu.iota {dimensions = array<i32: 1>} : vector<8x128xi32>
    %c8_i32 = arith.constant 8 : i32
    %15 = arith.muli %arg1, %c8_i32 : i32
    %16 = vector.broadcast %15 : i32 to vector<8x128xi32>
    %17 = arith.addi %16, %13 : vector<8x128xi32>
    %c128_i32 = arith.constant 128 : i32
    %18 = vector.broadcast %c128_i32 : i32 to vector<8x128xi32>
    %19 = arith.muli %17, %18 : vector<8x128xi32>
    %20 = arith.addi %19, %14 : vector<8x128xi32>
    %c256_i32 = arith.constant 256 : i32
    %21 = vector.broadcast %c256_i32 : i32 to vector<8x128xi32>
    %22 = arith.cmpi slt, %20, %21 : vector<8x128xi32>
    %23 = vector.shape_cast %22 : vector<8x128xi1> to vector<1x8x128xi1>
    %cst = arith.constant 0.000000e+00 : f32
    %24 = vector.shape_cast %23 : vector<1x8x128xi1> to vector<1x8x128xi1>
    %25 = vector.broadcast %24 : vector<1x8x128xi1> to vector<3x8x128xi1>
    %26 = vector.broadcast %cst : f32 to vector<3x8x128xf32>
    %27 = arith.select %25, %4, %26 : vector<3x8x128xi1>, vector<3x8x128xf32>
    %cst_8 = arith.constant 0.000000e+00 : f32
    %28 = vector.broadcast %cst_8 : f32 to vector<8x128xf32>
    %29 = arith.select %22, %8, %28 : vector<8x128xi1>, vector<8x128xf32>
    %cst_9 = arith.constant 0.000000e+00 : f32
    %30 = vector.broadcast %cst_9 : f32 to vector<8x128xf32>
    %31 = arith.select %22, %10, %30 : vector<8x128xi1>, vector<8x128xf32>
    %cst_10 = arith.constant 1.000000e+00 : f32
    %32 = vector.broadcast %cst_10 : f32 to vector<8x128xf32>
    %33 = arith.subf %32, %12 : vector<8x128xf32>
    %cst_11 = arith.constant 0.000000e+00 : f32
    %34 = vector.broadcast %cst_11 : f32 to vector<8x128xf32>
    %35 = arith.select %22, %33, %34 : vector<8x128xi1>, vector<8x128xf32>
    %36 = arith.addf %29, %31 : vector<8x128xf32>
    %cst_12 = arith.constant 0.000000e+00 : f32
    %cst_13 = arith.constant 1.000000e+00 : f32
    %37 = vector.broadcast %cst_12 : f32 to vector<8x128xf32>
    %38 = arith.maximumf %37, %36 : vector<8x128xf32>
    %39 = vector.broadcast %cst_13 : f32 to vector<8x128xf32>
    %40 = arith.minimumf %39, %38 : vector<8x128xf32>
    %cst_14 = arith.constant 1.000000e+00 : f32
    %41 = vector.broadcast %cst_14 : f32 to vector<8x128xf32>
    %42 = arith.subf %41, %40 : vector<8x128xf32>
    %43 = vector.shape_cast %42 : vector<8x128xf32> to vector<1x8x128xf32>
    %44 = vector.shape_cast %29 : vector<8x128xf32> to vector<1x8x128xf32>
    %45 = vector.shape_cast %31 : vector<8x128xf32> to vector<1x8x128xf32>
    %46 = tpu.concatenate %43, %44, %45 in 0 : vector<1x8x128xf32>, vector<1x8x128xf32>, vector<1x8x128xf32> -> vector<3x8x128xf32>
    %cst_15 = arith.constant dense<0xFF800000> : vector<8x128xf32>
    %47 = vector.multi_reduction <maximumf>, %27, %cst_15 [0] : vector<3x8x128xf32> to vector<8x128xf32>
    %48 = vector.shape_cast %47 : vector<8x128xf32> to vector<1x8x128xf32>
    %49 = vector.broadcast %48 : vector<1x8x128xf32> to vector<3x8x128xf32>
    %50 = arith.subf %27, %49 : vector<3x8x128xf32>
    %51 = math.exp %50 : vector<3x8x128xf32>
    %cst_16 = arith.constant dense<0.000000e+00> : vector<8x128xf32>
    %52 = vector.multi_reduction <add>, %51, %cst_16 [0] : vector<3x8x128xf32> to vector<8x128xf32>
    %53 = arith.divf %35, %52 : vector<8x128xf32>
    %54 = vector.shape_cast %53 : vector<8x128xf32> to vector<1x8x128xf32>
    %55 = vector.broadcast %54 : vector<1x8x128xf32> to vector<3x8x128xf32>
    %56 = arith.mulf %51, %55 : vector<3x8x128xf32>
    %57 = math.log %52 : vector<8x128xf32>
    %58 = arith.addf %47, %57 : vector<8x128xf32>
    %59 = arith.maximumf %29, %31 : vector<8x128xf32>
    %60 = arith.cmpf oge, %42, %59 : vector<8x128xf32>
    %61 = vector.extract_strided_slice %27 {offsets = [0, 0, 0], sizes = [1, 8, 128], strides = [1, 1, 1]} : vector<3x8x128xf32> to vector<1x8x128xf32>
    %62 = vector.shape_cast %61 : vector<1x8x128xf32> to vector<8x128xf32>
    %63 = arith.cmpf oge, %29, %31 : vector<8x128xf32>
    %64 = vector.extract_strided_slice %27 {offsets = [1, 0, 0], sizes = [1, 8, 128], strides = [1, 1, 1]} : vector<3x8x128xf32> to vector<1x8x128xf32>
    %65 = vector.shape_cast %64 : vector<1x8x128xf32> to vector<8x128xf32>
    %66 = vector.extract_strided_slice %27 {offsets = [2, 0, 0], sizes = [1, 8, 128], strides = [1, 1, 1]} : vector<3x8x128xf32> to vector<1x8x128xf32>
    %67 = vector.shape_cast %66 : vector<1x8x128xf32> to vector<8x128xf32>
    %68 = arith.select %63, %65, %67 : vector<8x128xi1>, vector<8x128xf32>
    %69 = arith.select %60, %62, %68 : vector<8x128xi1>, vector<8x128xf32>
    %70 = arith.subf %58, %69 : vector<8x128xf32>
    %71 = arith.mulf %70, %35 : vector<8x128xf32>
    %c0_17 = arith.constant 0 : index
    %c0_18 = arith.constant 0 : index
    %c0_19 = arith.constant 0 : index
    %c0_20 = arith.constant 0 : index
    %72 = vector.load %arg4[%c0_17, %c0_18, %c0_19, %c0_20] : memref<1x3x8x128xf32, #tpu.memory_space<vmem>>, vector<1x3x8x128xf32>
    %73 = vector.shape_cast %72 : vector<1x3x8x128xf32> to vector<3x8x128xf32>
    %74 = arith.mulf %56, %46 : vector<3x8x128xf32>
    %75 = arith.addf %73, %74 : vector<3x8x128xf32>
    %c0_21 = arith.constant 0 : index
    %c0_22 = arith.constant 0 : index
    %c0_23 = arith.constant 0 : index
    %c0_24 = arith.constant 0 : index
    %76 = vector.load %arg4[%c0_21, %c0_22, %c0_23, %c0_24] : memref<1x3x8x128xf32, #tpu.memory_space<vmem>>, vector<1x3x8x128xf32>
    %77 = vector.shape_cast %76 : vector<1x3x8x128xf32> to vector<3x8x128xf32>
    %78 = vector.shape_cast %75 : vector<3x8x128xf32> to vector<1x3x8x128xf32>
    tpu.vector_store %arg4[%c0_21, %c0_22, %c0_23, %c0_24], %78 {strides = array<i32>} : memref<1x3x8x128xf32, #tpu.memory_space<vmem>>, vector<1x3x8x128xf32>,
    %c0_25 = arith.constant 0 : index
    %c0_26 = arith.constant 0 : index
    %c0_27 = arith.constant 0 : index
    %c0_28 = arith.constant 0 : index
    %79 = vector.load %arg5[%c0_25, %c0_26, %c0_27, %c0_28] : memref<1x3x8x128xf32, #tpu.memory_space<vmem>>, vector<1x3x8x128xf32>
    %80 = vector.shape_cast %79 : vector<1x3x8x128xf32> to vector<3x8x128xf32>
    %81 = arith.addf %80, %56 : vector<3x8x128xf32>
    %c0_29 = arith.constant 0 : index
    %c0_30 = arith.constant 0 : index
    %c0_31 = arith.constant 0 : index
    %c0_32 = arith.constant 0 : index
    %82 = vector.load %arg5[%c0_29, %c0_30, %c0_31, %c0_32] : memref<1x3x8x128xf32, #tpu.memory_space<vmem>>, vector<1x3x8x128xf32>
    %83 = vector.shape_cast %82 : vector<1x3x8x128xf32> to vector<3x8x128xf32>
    %84 = vector.shape_cast %81 : vector<3x8x128xf32> to vector<1x3x8x128xf32>
    tpu.vector_store %arg5[%c0_29, %c0_30, %c0_31, %c0_32], %84 {strides = array<i32>} : memref<1x3x8x128xf32, #tpu.memory_space<vmem>>, vector<1x3x8x128xf32>,
    %c0_33 = arith.constant 0 : index
    %c0_34 = arith.constant 0 : index
    %c0_35 = arith.constant 0 : index
    %c0_36 = arith.constant 0 : index
    %85 = vector.load %arg6[%c0_33, %c0_34, %c0_35, %c0_36] : memref<1x3x8x128xf32, #tpu.memory_space<vmem>>, vector<1x3x8x128xf32>
    %86 = vector.shape_cast %85 : vector<1x3x8x128xf32> to vector<3x8x128xf32>
    %87 = vector.shape_cast %35 : vector<8x128xf32> to vector<1x8x128xf32>
    %88 = vector.broadcast %87 : vector<1x8x128xf32> to vector<3x8x128xf32>
    %89 = arith.mulf %46, %88 : vector<3x8x128xf32>
    %90 = arith.addf %86, %89 : vector<3x8x128xf32>
    %c0_37 = arith.constant 0 : index
    %c0_38 = arith.constant 0 : index
    %c0_39 = arith.constant 0 : index
    %c0_40 = arith.constant 0 : index
    %91 = vector.load %arg6[%c0_37, %c0_38, %c0_39, %c0_40] : memref<1x3x8x128xf32, #tpu.memory_space<vmem>>, vector<1x3x8x128xf32>
    %92 = vector.shape_cast %91 : vector<1x3x8x128xf32> to vector<3x8x128xf32>
    %93 = vector.shape_cast %90 : vector<3x8x128xf32> to vector<1x3x8x128xf32>
    tpu.vector_store %arg6[%c0_37, %c0_38, %c0_39, %c0_40], %93 {strides = array<i32>} : memref<1x3x8x128xf32, #tpu.memory_space<vmem>>, vector<1x3x8x128xf32>,
    %c0_41 = arith.constant 0 : index
    %c0_42 = arith.constant 0 : index
    %c0_43 = arith.constant 0 : index
    %94 = vector.load %arg7[%c0_41, %c0_42, %c0_43] : memref<1x8x128xf32, #tpu.memory_space<vmem>>, vector<1x8x128xf32>
    %95 = vector.shape_cast %94 : vector<1x8x128xf32> to vector<8x128xf32>
    %96 = arith.addf %95, %71 : vector<8x128xf32>
    %c0_44 = arith.constant 0 : index
    %c0_45 = arith.constant 0 : index
    %c0_46 = arith.constant 0 : index
    %97 = vector.load %arg7[%c0_44, %c0_45, %c0_46] : memref<1x8x128xf32, #tpu.memory_space<vmem>>, vector<1x8x128xf32>
    %98 = vector.shape_cast %97 : vector<1x8x128xf32> to vector<8x128xf32>
    %99 = vector.shape_cast %96 : vector<8x128xf32> to vector<1x8x128xf32>
    tpu.vector_store %arg7[%c0_44, %c0_45, %c0_46], %99 {strides = array<i32>} : memref<1x8x128xf32, #tpu.memory_space<vmem>>, vector<1x8x128xf32>,
    return
  }
  func.func @transform_0(%arg0: i32, %arg1: i32) -> (i32, i32, i32, i32) {
    %c0_i32 = arith.constant 0 : i32
    %c0_i32_0 = arith.constant 0 : i32
    %c0_i32_1 = arith.constant 0 : i32
    return %arg0, %c0_i32, %arg1, %c0_i32_0 : i32, i32, i32, i32
  }
  func.func @transform_1(%arg0: i32, %arg1: i32) -> (i32, i32, i32, i32) {
    %c0_i32 = arith.constant 0 : i32
    %c0_i32_0 = arith.constant 0 : i32
    %c0_i32_1 = arith.constant 0 : i32
    return %arg0, %c0_i32, %arg1, %c0_i32_0 : i32, i32, i32, i32
  }
  func.func @transform_2(%arg0: i32, %arg1: i32) -> (i32, i32, i32, i32) {
    %c0_i32 = arith.constant 0 : i32
    %c0_i32_0 = arith.constant 0 : i32
    %c0_i32_1 = arith.constant 0 : i32
    %c0_i32_2 = arith.constant 0 : i32
    return %arg0, %c0_i32, %c0_i32_0, %c0_i32_1 : i32, i32, i32, i32
  }
  func.func @transform_3(%arg0: i32, %arg1: i32) -> (i32, i32, i32, i32) {
    %c0_i32 = arith.constant 0 : i32
    %c0_i32_0 = arith.constant 0 : i32
    %c0_i32_1 = arith.constant 0 : i32
    %c0_i32_2 = arith.constant 0 : i32
    return %arg0, %c0_i32, %c0_i32_0, %c0_i32_1 : i32, i32, i32, i32
  }
  func.func @transform_4(%arg0: i32, %arg1: i32) -> (i32, i32, i32, i32) {
    %c0_i32 = arith.constant 0 : i32
    %c0_i32_0 = arith.constant 0 : i32
    %c0_i32_1 = arith.constant 0 : i32
    %c0_i32_2 = arith.constant 0 : i32
    return %arg0, %c0_i32, %c0_i32_0, %c0_i32_1 : i32, i32, i32, i32
  }
  func.func @transform_5(%arg0: i32, %arg1: i32) -> (i32, i32, i32) {
    %c0_i32 = arith.constant 0 : i32
    %c0_i32_0 = arith.constant 0 : i32
    %c0_i32_1 = arith.constant 0 : i32
    return %arg0, %c0_i32, %c0_i32_0 : i32, i32, i32
  }
}

</mosaic_0001>

<bundles_post_ra>
// kernel: tpu_custom_call.1
= control target key start
LH: loop header
LB: loop body
LE: loop exit
PB: predicated region body
PF: predicated region fallthrough
CT: control target
= control target key end

     0   :  { %s1514_s0 = inlined_call_operand.hbm [shape: f32[2,3,8,128], index: 0, kind: input, shape index: {}]   ;;  %s1515_s1 = inlined_call_operand.hbm [shape: f32[2,3,8,128], index: 1, kind: input, shape index: {}]   ;;  %s1516_s2 = inlined_call_operand.hbm [shape: f32[2,3,8,128], index: 2, kind: output, shape index: {0}]   ;;  %s1517_s3 = inlined_call_operand.hbm [shape: f32[2,3,8,128], index: 3, kind: output, shape index: {1}]   ;;  %s1518_s4 = inlined_call_operand.hbm [shape: f32[2,3,8,128], index: 4, kind: output, shape index: {2}]   ;;  %s1519_s5 = inlined_call_operand.hbm [shape: f32[2,8,128], index: 5, kind: output, shape index: {3}]  }
   0x1   :  { %1527 = sst [smem:[#allocation20_spill]] %s1514_s0 }
   0x2   :  { %1528 = sst [smem:[#allocation21_spill]] %s1515_s1 }
   0x3   :  { %11 = vsyncpa [#allocation3], 0 }
   0x4   :  { %13 = vsyncpa [#allocation3 + $0x1], 0 }
   0x5   :  { %14 = vsyncpa [#allocation6], 0 }
   0x6   :  { %16 = vsyncpa [#allocation6 + $0x1], 0 }
   0x7   :  { %17 = vsyncpa [#allocation4], 0 }
   0x8   :  { %19 = vsyncpa [#allocation4 + $0x1], 0 }
   0x9   :  { %20 = vsyncpa [#allocation9], 0 }
   0xa   :  { %22 = vsyncpa [#allocation9 + $0x1], 0 }
   0xb   :  { %23 = vsyncpa [#allocation12], 0 }
   0xc   :  { %25 = vsyncpa [#allocation12 + $0x1], 0  ;;  %s1111_s18 = smov 0   ;;  %s1113_s19 = smov 0  }
   0xd   :  { %s1115_s20 = smov 0   ;;  %s1117_s21 = smov 0  }
   0xe   :  { %s1119_s22 = smov 0   ;;  %s1121_s23 = smov 0  }
   0xf LB: > { %1529 = sst [smem:[#allocation18_spill]] %s1065_s22  ;;  %s1142_s24 = sadd.s32 4294967295, %s1069_s23   ;;  %s1069_s23 = sphi %s1121_s23, %s31_s23   ;;  %s1065_s22 = sphi %s1119_s22, %s1552_s22   ;;  %s1061_s21 = sphi %s1117_s21, %s1551_s21   ;;  %s1057_s20 = sphi %s1115_s20, %s1555_s20   ;;  %s1053_s19 = sphi %s1113_s19, %s1554_s19   ;;  %s1049_s18 = sphi %s1111_s18, %s1553_s18  }
  0x10   : > { %s1520_s25 = sadd.s32 4294967294, %s1069_s23   ;;  %s43_s26 = sadd.s32 1, %s1065_s22 }
  0x11   : > { %s52_s27 = sadd.s32 1, %s1057_s20  ;;  %p45_p0 = scmp.ge.s32.totalorder %s43_s26, 2 }
  0x12   : > { %p59_p1 = scmp.ne.s32.totalorder %s1057_s20, %s1053_s19  ;;  %p60_p2 = scmp.eq.s32.totalorder %s1069_s23, 0 }
  0x13   : > { %p65_p3 = scmp.ne.s32.totalorder %s1053_s19, %s1049_s18  ;;  %s1557_s26 = smov (%p45_p0, %s43_s26), 0 }
  0x14   : > { %1530 = sst [smem:[#allocation19_spill]] %s1557_s26  ;;  %p1154_p4 = por %p60_p2, %p59_p1 }
  0x15   : > { %p66_p5 = scmp.eq.s32.totalorder %s1142_s24, 0  ;;  %s47_s29 = ssub.s32 %s1065_s22, %s1557_s26 }
  0x16   : > { %p117_p6 = scmp.eq.s32.totalorder %s1142_s24, 1  ;;  %p50_p7 = scmp.eq.s32.totalorder %s47_s29, 0 }
  0x17   : > { %p1162_p8 = por %p66_p5, %p65_p3  ;;  %p123_p10 = scmp.eq.s32.totalorder %s1520_s25, 1 }
  0x18   : > { %p1166_p9 = por %p117_p6, %p59_p1  ;;  %p766_p13 = scmp.lt.s32.totalorder %s1069_s23, 2 }
  0x19   : > { %s1532_s30 = scalar_select %p1162_p8, 1, 0 }
  0x1a   : > { %s1533_s6 = scalar_select %p1166_p9, 1, 0 }
  0x1b   : > { %s1173_s7 = scalar_select %p50_p7, %s1057_s20, %s52_s27  }
  0x1c   : > { %p1175_p11 = por %p123_p10, %p65_p3  ;;  %s1182_s9 = sand.u32 1, %s1057_s20  }
  0x1d   : > { %s726_s10 = smul.u32 24, %s1182_s9  ;;  %p1188_p0 = pnand %p766_p13, %p1154_p4 }
  0x1e   : > { %s1534_s8 = scalar_select %p1175_p11, 1, 0 }
  0x1f   : > { %s1521_s11 = smul.u32 384, %s1065_s22  ;;  %s1536_s0 = sld [smem:[#allocation20_spill]] }
  0x20   : > { %s225_s16 = scalar_lea.vmem [#allocation2], %s726_s10  ;;  %s222_s27 = scalar_lea.sflag [#allocation3], %s1182_s9 }
  0x21   : > { %s233_s17 = sshll.u32 %s225_s16, 4  ;;  %p833_p3 = pneg %p1188_p0  ;;  %s1201_s17 = int_to_ptr.vmem [resolvable:$true] %s233_s17 }
  0x25   : > { %s1197_s15 = scalar_lea.hbm %s1536_s0, %s1521_s11  ;;  %s836_s14 = scalar_lea.hbm %s1536_s0, 768 }
  0x26   : > { %s831_s28 = scalar_lea.hbm %s1197_s15, 384  ;;  %p837_p6 = scmp.lt.u32.totalorder %s1197_s15, %s1536_s0 }
  0x27   : > { %p832_p2 = scmp.ne.s32.totalorder %s1197_s15, %s831_s28  ;;  %p838_p7 = scmp.lt.u32.totalorder %s836_s14, %s831_s28 }
  0x28   : > { %p840_p13 = scmp.lt.u32.totalorder %s831_s28, %s1197_s15 }
  0x29   : > { %p834_p4 = pnand %p833_p3, %p832_p2  ;;  %p839_p10 = por %p838_p7, %p837_p6 }
  0x2b   : > { %p835_p5 = pneg %p834_p4  ;;  %p841_p12 = por %p840_p13, %p839_p10 }
  0x2d   : > { %p842_p1 = pnand %p841_p12, %p835_p5 }
  0x2f   : > { %845 = shalt.err (!%p842_p1)
}
  0x30   : > { %s846_s16 = scalar_lea.vmem %s1201_s17, 384  ;;  %s1071_s29 = smov [#allocation2]  }
  0x31   : > { %p847_p2 = scmp.ne.s32.totalorder %s1201_s17, %s846_s16  ;;  %s851_s13 = sshll.u32 %s1071_s29, 4  ;;  %s852_s13 = int_to_ptr.vmem [resolvable:$false] %s851_s13 }
  0x32   : > { %s853_s25 = scalar_lea.vmem %s852_s13, 768  ;;  %p854_p9 = scmp.lt.s32.totalorder %s1201_s17, %s852_s13 }
  0x33   : > { %p849_p4 = pnand %p847_p2, %p833_p3  ;;  %p855_p6 = scmp.lt.s32.totalorder %s853_s25, %s846_s16 }
  0x35   : > { %p850_p11 = pneg %p849_p4  ;;  %p856_p7 = por %p855_p6, %p854_p9 }
  0x37   : > { %p857_p10 = pnand %p856_p7, %p850_p11 }
  0x39   : > { %860 = shalt.err (!%p857_p10)
}
  0x3a   : > { %s1524_s11 = smov 128   ;;  %s1073_s28 = smov 8  }
  0x3b   : > { %749 = dma.hbm_to_vmem [thread:$0]  (!%p1188_p0), %s1197_s15, 384, %s1201_s17, %s222_s27, %s1524_s11, %s1524_s11, %s1073_s28  }
  0x3c   : > { %p263_p9 = scmp.lt.s32.totalorder %s1069_s23, 3  ;;  %s1537_s14 = smul.u32 384, %s1065_s22 }
  0x3d   : > { %s1538_s1 = sld [smem:[#allocation21_spill]]  ;;  %p1539_p11 = scmp.ge.s32.totalorder %s1069_s23, 1 }
  0x3e   : > { %s247_s0 = scalar_lea.vmem [#allocation5], %s726_s10  ;;  %s244_s15 = scalar_lea.sflag [#allocation6], %s1182_s9 }
  0x3f   : > { %p1245_p12 = pnand %p1539_p11, %p263_p9  ;;  %s255_s26 = sshll.u32 %s247_s0, 4  ;;  %s1251_s26 = int_to_ptr.vmem [resolvable:$true] %s255_s26 }
  0x43   : > { %s1241_s13 = scalar_lea.hbm %s1538_s1, %s1537_s14  ;;  %s866_s16 = scalar_lea.hbm %s1538_s1, 768 }
  0x44   : > { %s861_s17 = scalar_lea.hbm %s1241_s13, 384  ;;  %p867_p2 = scmp.lt.u32.totalorder %s1241_s13, %s1538_s1 }
  0x45   : > { %p862_p1 = scmp.ne.s32.totalorder %s1241_s13, %s861_s17  ;;  %p868_p4 = scmp.lt.u32.totalorder %s866_s16, %s861_s17 }
  0x46   : > { %p870_p7 = scmp.lt.u32.totalorder %s861_s17, %s1241_s13 }
  0x47   : > { %p864_p5 = pnand %p862_p1, %p833_p3  ;;  %p869_p6 = por %p868_p4, %p867_p2 }
  0x49   : > { %p865_p13 = pneg %p864_p5  ;;  %p871_p10 = por %p870_p7, %p869_p6 }
  0x4b   : > { %p872_p9 = pnand %p871_p10, %p865_p13 }
  0x4d   : > { %875 = shalt.err (!%p872_p9)
}
  0x4e   : > { %s876_s0 = scalar_lea.vmem %s1251_s26, 384  ;;  %s1074_s10 = smov [#allocation5]  }
  0x4f   : > { %p877_p11 = scmp.ne.s32.totalorder %s1251_s26, %s876_s0  ;;  %s881_s27 = sshll.u32 %s1074_s10, 4  ;;  %s882_s27 = int_to_ptr.vmem [resolvable:$false] %s881_s27 }
  0x50   : > { %s883_s11 = scalar_lea.vmem %s882_s27, 768  ;;  %p884_p8 = scmp.lt.s32.totalorder %s1251_s26, %s882_s27 }
  0x51   : > { %p879_p1 = pnand %p877_p11, %p833_p3  ;;  %p885_p2 = scmp.lt.s32.totalorder %s883_s11, %s876_s0 }
  0x53   : > { %p880_p5 = pneg %p879_p1  ;;  %p886_p4 = por %p885_p2, %p884_p8 }
  0x55   : > { %p887_p6 = pnand %p886_p4, %p880_p5 }
  0x57   : > { %890 = shalt.err (!%p887_p6)
}
  0x58   : > { %s1541_s17 = smov 128   ;;  %267 = sbr.rel (%p1245_p12) target bundleno = 238 (0xee), region = 28 }
  0x59   : > { %752 = dma.hbm_to_vmem [thread:$0]  (!%p1188_p0), %s1241_s13, 384, %s1251_s26, %s244_s15, %s1541_s17, %s1541_s17, %s1073_s28  }
  0x5a   : > { %s1285_s14 = sand.u32 (!%p1245_p12), 1, %s1053_s19   ;;  %p1542_p8 = scmp.ne.s32.totalorder (!%p1245_p12), %s1532_s30, 0 }
  0x5b   : > { %s1288_s16 = smul.u32 (!%p1245_p12), 24, %s1285_s14  ;;  %s270_s12 = scalar_lea.sflag (!%p1245_p12), [#allocation3], %s1285_s14 }
  0x5d   : > { %s273_s29 = scalar_lea.vmem (!%p1245_p12), [#allocation2], %s1288_s16 }
  0x5f   : > { %1028 = dma.done.wait (%p1542_p8), %s270_s12, 384  }
  0x60   : > { %1030 = vsyncadd (%p1542_p8), %s270_s12, 4294966912  ;;  %s279_s26 = scalar_lea.sflag [#allocation6], %s1285_s14  ;;  %s282_s9 = scalar_lea.vmem [#allocation5], %s1288_s16 }
  0x61   : > { %1032 = dma.done.wait (%p1542_p8), %s279_s26, 384  }
  0x62   : > { %1034 = vsyncadd (%p1542_p8), %s279_s26, 4294966912  ;;  %v349_v0 = vlaneseq  ;;  %v343_v5 = vld [vmem:[%s273_s29] sm:$0xff]  ;;  %v344_v6 = vld [vmem:[%s273_s29 + $0x8] sm:$0xff]  ;;  %s1311_s30 = scalar_lea.vmem [#allocation10], %s1288_s16  ;;  %s718_s28 = sshll.u32 %s1285_s14, 3 }
  0x63   : > { %v345_v7 = vld [vmem:[%s273_s29 + $0x10] sm:$0xff]  ;;  %v348_v8 = vld [vmem:[%s282_s9 + $0x10] sm:$0xff]  ;;  %v347_v10 = vld [vmem:[%s282_s9 + $0x8] sm:$0xff]  ;;  %s731_s25 = smul.u32 384, %s1061_s21  ;;  %s314_s15 = scalar_lea.vmem [#allocation8], %s1288_s16 }
  0x64   : > { %v350_v1 = vshrl.u32 %v349_v0, 7  ;;  %v352_v2 = vand.u32 127, %v349_v0  ;;  %v346_v9 = vld [vmem:[%s282_s9] sm:$0xff]  ;;  %v366_v14 = vsub.f32 1.0, %v348_v8  ;;  %s481_s0 = sshll.u32 %s314_s15, 4  ;;  %s1332_s17 = scalar_lea.vmem [#allocation7], %s1288_s16  ;;  %s1338_s0 = int_to_ptr.vmem [resolvable:$true] %s481_s0 }
  0x65   : > { %s1329_s11 = scalar_lea.hbm %s1517_s3, %s731_s25  ;;  %s465_s12 = sshll.u32 %s1332_s17, 4  ;;  %s1346_s12 = int_to_ptr.vmem [resolvable:$true] %s465_s12 }
  0x66   : > { %v356_v3 = vmul.u32 128, %v350_v1  ;;  %s497_s29 = sshll.u32 %s1311_s30, 4  ;;  %s1344_s16 = scalar_lea.hbm %s1516_s2, %s731_s25  ;;  %s1357_s29 = int_to_ptr.vmem [resolvable:$true] %s497_s29 }
  0x67   : > { %s1351_s13 = scalar_lea.hbm %s1518_s4, %s731_s25  ;;  %s1362_s26 = scalar_lea.vmem [#allocation11], %s718_s28 }
  0x68   : > { %v357_v4 = vadd.s32 %v356_v3, %v352_v2  ;;  %s1545_s25 = sand.u32 1, %s1142_s24   ;;  %s891_s27 = scalar_lea.vmem %s1338_s0, 384 }
  0x69   : > { %s1370_s10 = scalar_lea.sflag [#allocation9], %s1545_s25  ;;  %p892_p0 = scmp.ne.s32.totalorder %s1338_s0, %s891_s27 }
  0x6a   : > { %vm358_vm0 = vcmp.lt.s32.totalorder %v357_v4, 256  ;;  %p1546_p3 = scmp.ne.s32.totalorder %s1533_s6, 0  ;;  %s1075_s1 = smov [#allocation8]  }
  0x6b   : > { %v1302_v11 = vsel %vm358_vm0, %v343_v5, 0.0  ;;  %v362_v12 = vsel %vm358_vm0, %v344_v6, 0.0  ;;  %v363_v13 = vsel %vm358_vm0, %v345_v7, 0.0  ;;  %v364_v16 = vsel %vm358_vm0, %v346_v9, 0.0  ;;  %s895_s22 = sshll.u32 %s1075_s1, 4  ;;  %s896_s22 = int_to_ptr.vmem [resolvable:$false] %s895_s22 }
  0x6c   : > { %v372_v15 = vmax.f32 %v1302_v11, %v362_v12  ;;  %v365_v17 = vsel %vm358_vm0, %v347_v10, 0.0  ;;  %v1305_v18 = vsel %vm358_vm0, %v366_v14, 0.0  ;;  %p893_p12 = pnand %p892_p0, %p1546_p3  ;;  %p898_p7 = scmp.lt.s32.totalorder %s1338_s0, %s896_s22 }
  0x6d   : > { %v368_v19 = vadd.f32 %v365_v17, %v364_v16  ;;  %v425_v21 = vmul.f32 %v1305_v18, %v364_v16  ;;  %v426_v22 = vmul.f32 %v1305_v18, %v365_v17  ;;  %v393_v38 = vmax.f32 %v364_v16, %v365_v17 }
  0x6e   : > { %v373_v20 = vmax.f32 %v372_v15, %v363_v13  ;;  %vm395_vm1 = vcmp.ge.f32.partialorder %v364_v16, %v365_v17  ;;  %p894_p13 = pneg %p893_p12 }
  0x6f   : > { %v369_v23 = vmax.f32 %v368_v19, 0.0  ;;  %431 = vst [vmem:[%s1311_s30 + $0x8] sm:$0xff] %v425_v21  ;;  %432 = vst [vmem:[%s1311_s30 + $0x10] sm:$0xff] %v426_v22  ;;  %v396_v41 = vsel %vm395_vm1, %v362_v12, %v363_v13 }
  0x70   : > { %v374_v24 = vsub.f32 %v1302_v11, %v373_v20  ;;  %v375_v25 = vsub.f32 %v362_v12, %v373_v20  ;;  %v376_v26 = vsub.f32 %v363_v13, %v373_v20 }
  0x71   : > { %v370_v27 = vmin.f32 %v369_v23, 1.0 }
  0x72   : > { %v377_v28 = vmul.f32 1.442695, %v374_v24  ;;  %v379_v29 = vmul.f32 1.442695, %v375_v25  ;;  %v381_v30 = vmul.f32 1.442695, %v376_v26 }
  0x73   : > { %v371_v31 = vsub.f32 1.0, %v370_v27 }
  0x74   : > { %821 = vpow2.f32 %v377_v28 }
  0x75   : > { %823 = vpow2.f32 %v379_v29  ;;  %v424_v32 = vmul.f32 %v371_v31, %v1305_v18  ;;  %vm1320_vm2 = vcmp.ge.f32.partialorder %v371_v31, %v393_v38 }
  0x76   : > { %825 = vpow2.f32 %v381_v30  ;;  %v397_v48 = vsel %vm1320_vm2, %v1302_v11, %v396_v41 }
  0x77   : > { %430 = vst [vmem:[%s1311_s30] sm:$0xff] %v424_v32  ;;  %s723_s30 = sshll.u32 %s1061_s21, 7 }
  0x7e   : > { %v822_v33 = vpop.eup %821 }
  0x7f   : > { %v824_v34 = vpop.eup %823 }
  0x80   : > { %v826_v35 = vpop.eup %825  ;;  %v383_v36 = vadd.f32 %v824_v34, %v822_v33 }
  0x82   : > { %v384_v37 = vadd.f32 %v826_v35, %v383_v36 }
  0x84   : > { %827 = vrcp.f32 %v384_v37 }
  0x85   : > { %829 = vlog2.f32 %v384_v37 }
  0x8e   : > { %v828_v39 = vpop.eup %827 }
  0x8f   : > { %v830_v42 = vpop.eup %829  ;;  %v386_v43 = vmul.f32 %v828_v39, %v1305_v18 }
  0x90   : > { %v391_v44 = vmul.f32 0.6931472, %v830_v42 }
  0x91   : > { %v387_v45 = vmul.f32 %v822_v33, %v386_v43  ;;  %v388_v46 = vmul.f32 %v824_v34, %v386_v43  ;;  %v389_v47 = vmul.f32 %v826_v35, %v386_v43 }
  0x92   : > { %v392_v49 = vadd.f32 %v391_v44, %v373_v20 }
  0x93   : > { %v403_v50 = vmul.f32 %v387_v45, %v371_v31  ;;  %v1353_v51 = vmul.f32 %v388_v46, %v364_v16  ;;  %v1355_v52 = vmul.f32 %v389_v47, %v365_v17  ;;  %418 = vst [vmem:[%s314_s15] sm:$0xff] %v387_v45  ;;  %419 = vst [vmem:[%s314_s15 + $0x8] sm:$0xff] %v388_v46 }
  0x94   : > { %v398_v53 = vsub.f32 %v392_v49, %v397_v48  ;;  %420 = vst [vmem:[%s314_s15 + $0x10] sm:$0xff] %v389_v47  ;;  %s897_s15 = scalar_lea.vmem %s896_s22, 768 }
  0x95   : > { %p899_p10 = scmp.lt.s32.totalorder %s897_s15, %s891_s27 }
  0x96   : > { %v1366_v54 = vmul.f32 %v398_v53, %v1305_v18 }
  0x97   : > { %p900_p9 = por %p899_p10, %p898_p7 }
  0x99   : > { %p901_p11 = pnand %p900_p9, %p894_p13 }
  0x9b   : > { %904 = shalt.err (!%p901_p11)
}
  0x9c   : > { %s905_s24 = scalar_lea.hbm %s1329_s11, 384  ;;  %s909_s1 = scalar_lea.hbm %s1517_s3, 768 }
  0x9d   : > { %p906_p1 = scmp.ne.s32.totalorder %s1329_s11, %s905_s24  ;;  %p910_p4 = scmp.lt.u32.totalorder %s1329_s11, %s1517_s3 }
  0x9e   : > { %p911_p6 = scmp.lt.u32.totalorder %s909_s1, %s905_s24  ;;  %p913_p0 = scmp.lt.u32.totalorder %s905_s24, %s1329_s11 }
  0x9f   : > { %p907_p5 = pnand %p906_p1, %p1546_p3 }
  0xa0   : > { %p912_p8 = por %p911_p6, %p910_p4 }
  0xa1   : > { %p908_p2 = pneg %p907_p5 }
  0xa2   : > { %p914_p12 = por %p913_p0, %p912_p8 }
  0xa4   : > { %p915_p13 = pnand %p914_p12, %p908_p2 }
  0xa6   : > { %918 = shalt.err (!%p915_p13)
}
  0xa7   : > { %s1076_s27 = smov 128   ;;  %s1077_s15 = smov 8   ;;  %409 = vst [vmem:[%s1332_s17] sm:$0xff] %v403_v50 }
  0xa8   : > { %739 = dma.vmem_to_hbm [thread:$0]  (%p1546_p3), %s1338_s0, 384, %s1329_s11, %s1370_s10, %s1076_s27, %s1076_s27, %s1077_s15  }
  0xa9   : > { %s919_s9 = scalar_lea.vmem %s1357_s29, 384  ;;  %s1078_s24 = smov [#allocation10]  }
  0xaa   : > { %p920_p7 = scmp.ne.s32.totalorder %s1357_s29, %s919_s9  ;;  %s923_s28 = sshll.u32 %s1078_s24, 4  ;;  %s924_s28 = int_to_ptr.vmem [resolvable:$false] %s923_s28 }
  0xab   : > { %s925_s25 = scalar_lea.vmem %s924_s28, 768  ;;  %p926_p11 = scmp.lt.s32.totalorder %s1357_s29, %s924_s28 }
  0xac   : > { %p921_p10 = pnand %p920_p7, %p1546_p3  ;;  %p927_p1 = scmp.lt.s32.totalorder %s925_s25, %s919_s9 }
  0xae   : > { %p922_p9 = pneg %p921_p10  ;;  %p928_p5 = por %p927_p1, %p926_p11 }
  0xb0   : > { %p929_p2 = pnand %p928_p5, %p922_p9 }
  0xb2   : > { %932 = shalt.err (!%p929_p2)
}
  0xb3   : > { %s933_s0 = scalar_lea.hbm %s1351_s13, 384  ;;  %s937_s22 = scalar_lea.hbm %s1518_s4, 768 }
  0xb4   : > { %p934_p4 = scmp.ne.s32.totalorder %s1351_s13, %s933_s0  ;;  %p938_p0 = scmp.lt.u32.totalorder %s1351_s13, %s1518_s4 }
  0xb5   : > { %p939_p12 = scmp.lt.u32.totalorder %s937_s22, %s933_s0  ;;  %p941_p7 = scmp.lt.u32.totalorder %s933_s0, %s1351_s13 }
  0xb6   : > { %p935_p6 = pnand %p934_p4, %p1546_p3 }
  0xb7   : > { %p940_p13 = por %p939_p12, %p938_p0 }
  0xb8   : > { %p936_p8 = pneg %p935_p6 }
  0xb9   : > { %p942_p10 = por %p941_p7, %p940_p13 }
  0xbb   : > { %p943_p9 = pnand %p942_p10, %p936_p8 }
  0xbd   : > { %946 = shalt.err (!%p943_p9)
}
  0xbe   : > { %740 = dma.vmem_to_hbm [thread:$0]  (%p1546_p3), %s1357_s29, 384, %s1351_s13, %s1370_s10, %s1076_s27, %s1076_s27, %s1077_s15  }
  0xbf   : > { %410 = vst [vmem:[%s1332_s17 + $0x8] sm:$0xff] %v1353_v51  ;;  %411 = vst [vmem:[%s1332_s17 + $0x10] sm:$0xff] %v1355_v52  ;;  %s1432_s0 = scalar_lea.hbm %s1519_s5, %s723_s30  ;;  %s1547_s11 = sshll.u32 %s1362_s26, 4  ;;  %s1436_s11 = int_to_ptr.vmem [resolvable:$true] %s1547_s11 }
  0xc0   : > { %s437_s1 = scalar_lea.sflag [#allocation4], %s1285_s14  ;;  %s947_s22 = scalar_lea.vmem %s1346_s12, 384 }
  0xc1   : > { %p948_p11 = scmp.ne.s32.totalorder %s1346_s12, %s947_s22  ;;  %s1079_s13 = smov [#allocation7]  }
  0xc2   : > { %s951_s29 = sshll.u32 %s1079_s13, 4  ;;  %s952_s29 = int_to_ptr.vmem [resolvable:$false] %s951_s29 }
  0xc3   : > { %p949_p1 = pnand %p948_p11, %p1546_p3  ;;  %s953_s10 = scalar_lea.vmem %s952_s29, 768 }
  0xc4   : > { %p954_p2 = scmp.lt.s32.totalorder %s1346_s12, %s952_s29  ;;  %p955_p4 = scmp.lt.s32.totalorder %s953_s10, %s947_s22 }
  0xc5   : > { %p950_p5 = pneg %p949_p1 }
  0xc6   : > { %p956_p6 = por %p955_p4, %p954_p2 }
  0xc8   : > { %p957_p8 = pnand %p956_p6, %p950_p5 }
  0xca   : > { %960 = shalt.err (!%p957_p8)
}
  0xcb   : > { %s961_s21 = scalar_lea.hbm %s1344_s16, 384  ;;  %s965_s24 = scalar_lea.hbm %s1516_s2, 768 }
  0xcc   : > { %p962_p0 = scmp.ne.s32.totalorder %s1344_s16, %s961_s21  ;;  %p966_p7 = scmp.lt.u32.totalorder %s1344_s16, %s1516_s2 }
  0xcd   : > { %p967_p10 = scmp.lt.u32.totalorder %s965_s24, %s961_s21  ;;  %p969_p11 = scmp.lt.u32.totalorder %s961_s21, %s1344_s16 }
  0xce   : > { %p963_p12 = pnand %p962_p0, %p1546_p3 }
  0xcf   : > { %p968_p9 = por %p967_p10, %p966_p7 }
  0xd0   : > { %p964_p13 = pneg %p963_p12 }
  0xd1   : > { %p970_p1 = por %p969_p11, %p968_p9 }
  0xd3   : > { %p971_p5 = pnand %p970_p1, %p964_p13 }
  0xd5   : > { %974 = shalt.err (!%p971_p5)
}
  0xd6   : > { %738 = dma.vmem_to_hbm [thread:$0]  (%p1546_p3), %s1346_s12, 384, %s1344_s16, %s437_s1, %s1076_s27, %s1076_s27, %s1077_s15  }
  0xd7   : > { %435 = vst [vmem:[%s1362_s26] sm:$0xff] %v1366_v54  ;;  %s452_s25 = scalar_lea.sflag [#allocation12], %s1285_s14  ;;  %s975_s22 = scalar_lea.vmem %s1436_s11, 128 }
  0xd8   : > { %p976_p2 = scmp.ne.s32.totalorder %s1436_s11, %s975_s22  ;;  %s1080_s13 = smov [#allocation11]  }
  0xd9   : > { %s979_s29 = sshll.u32 %s1080_s13, 4  ;;  %s980_s29 = int_to_ptr.vmem [resolvable:$false] %s979_s29 }
  0xda   : > { %p977_p4 = pnand %p976_p2, %p1546_p3  ;;  %s981_s10 = scalar_lea.vmem %s980_s29, 256 }
  0xdb   : > { %p982_p8 = scmp.lt.s32.totalorder %s1436_s11, %s980_s29  ;;  %p983_p0 = scmp.lt.s32.totalorder %s981_s10, %s975_s22 }
  0xdc   : > { %p978_p6 = pneg %p977_p4 }
  0xdd   : > { %p984_p12 = por %p983_p0, %p982_p8 }
  0xdf   : > { %p985_p13 = pnand %p984_p12, %p978_p6 }
  0xe1   : > { %988 = shalt.err (!%p985_p13)
}
  0xe2   : > { %s989_s14 = scalar_lea.hbm %s1432_s0, 128  ;;  %s993_s26 = scalar_lea.hbm %s1519_s5, 256 }
  0xe3   : > { %p990_p7 = scmp.ne.s32.totalorder %s1432_s0, %s989_s14  ;;  %p994_p11 = scmp.lt.u32.totalorder %s1432_s0, %s1519_s5 }
  0xe4   : > { %p995_p1 = scmp.lt.u32.totalorder %s993_s26, %s989_s14  ;;  %p997_p2 = scmp.lt.u32.totalorder %s989_s14, %s1432_s0 }
  0xe5   : > { %p991_p10 = pnand %p990_p7, %p1546_p3 }
  0xe6   : > { %p996_p5 = por %p995_p1, %p994_p11 }
  0xe7   : > { %p992_p9 = pneg %p991_p10 }
  0xe8   : > { %p998_p4 = por %p997_p2, %p996_p5 }
  0xea   : > { %p999_p6 = pnand %p998_p4, %p992_p9 }
  0xec   : > { %1002 = shalt.err (!%p999_p6)
}
  0xed   : > { %741 = dma.vmem_to_hbm [thread:$0]  (%p1546_p3), %s1436_s11, 128, %s1432_s0, %s452_s25  }
  0xee PF: > { %s525_s1 = sand.u32 1, %s1049_s18   ;;  %p1548_p8 = scmp.ne.s32.totalorder %s1534_s8, 0 }
  0xef   : > { %p1549_p0 = scmp.ge.s32.totalorder %s1069_s23, 2  ;;  %s526_s21 = scalar_lea.sflag [#allocation4], %s525_s1 }
  0xf1   : > { %p754_p12 = pnand %p1549_p0, %p1548_p8 }
  0xf3   : > { %1036 = dma.done.wait (!%p754_p12), %s526_s21, 384  }
  0xf4   : > { %1038 = vsyncadd (!%p754_p12), %s526_s21, 4294966912  ;;  %s1550_s17 = sadd.s32 4294967294, %s1069_s23  }
  0xf5   : > { %s534_s30 = sand.u32 1, %s1550_s17  }
  0xf6   : > { %s535_s24 = scalar_lea.sflag [#allocation9], %s534_s30 }
  0xf7   : > { %1040 = dma.done.wait (!%p754_p12), %s535_s24, 768  }
  0xf8   : > { %1042 = vsyncadd (!%p754_p12), %s535_s24, 4294966528  ;;  %s553_s6 = scalar_lea.sflag [#allocation12], %s525_s1 }
  0xf9   : > { %1044 = dma.done.wait (!%p754_p12), %s553_s6, 128  }
  0xfa   : > { %1046 = vsyncadd (!%p754_p12), %s553_s6, 4294967168  ;;  %s31_s23 = sadd.s32 1, %s1069_s23   ;;  %s1551_s21 = sld [smem:[#allocation18_spill]] }
  0xfb   : > { %p28_p3 = scmp.ge.s32.totalorder %s31_s23, 4   ;;  %s1552_s22 = sld [smem:[#allocation19_spill]] }
  0xfc   : > { %s1553_s18 = smov %s1053_s19  ;;  %s1554_s19 = smov %s1057_s20 }
  0xfd   : > { %s1555_s20 = smov %s1173_s7  ;;  %30 = sbr.rel (!%p28_p3) target bundleno = 15 (0xf), region = 139 }
 0x104   :  { %558 = vsyncpa [#allocation3], 1 }
 0x105   :  { %560 = vsyncpa [#allocation3 + $0x1], 1 }
 0x106   :  { %561 = vsyncpa [#allocation6], 1 }
 0x107   :  { %563 = vsyncpa [#allocation6 + $0x1], 1 }
 0x108   :  { %564 = vsyncpa [#allocation4], 1 }
 0x109   :  { %566 = vsyncpa [#allocation4 + $0x1], 1 }
 0x10a   :  { %567 = vsyncpa [#allocation9], 1 }
 0x10b   :  { %569 = vsyncpa [#allocation9 + $0x1], 1 }
 0x10c   :  { %570 = vsyncpa [#allocation12], 1 }
 0x10d   :  { %572 = vsyncpa [#allocation12 + $0x1], 1 }

</bundles_post_ra>
